<compile_context>
chip_gen: v7x
topology: tpu7x:2x2x1
jax: 0.10.0
libtpu: 0.0.40
codegen_flags: <defaults>
</compile_context>

<pallas_src>
import jax
import jax.numpy as jnp
from jax import lax
from jax.experimental import pallas as pl
from jax.experimental.pallas import tpu as pltpu

NUM_LAYERS = 4


def deepset_kernel(x_ref, avg_ref, exp_ref, *refs):
    """Fused DeepSetModule forward, whole (small) batch in one kernel call.

    x_ref   : (B*N, F0)  activations, pre-flattened in the wrapper
    avg_ref : (B, B*N)   per-set averaging matrix (1/N inside each set block)
    exp_ref : (B*N, B)   per-set broadcast matrix (1.0 inside each set block)
    refs = [WsumT0, WlT0, bsum0, ..., WsumT3, WlT3, bsum3, wfin_row, bfin, out_ref]
      WsumT_i = (Wg_i + Wl_i)^T : (F_in_i, F_out_i)   folded gamma+Lambda weight
      WlT_i                     : (F_in_i, F_out_i)   mean-correction weight
      bsum_i  = bg_i + bl_i     : (1, F_out_i)
      wfin_row                  : (1, F_last)
      bfin                      : (1, 1)
      out_ref                   : (1, B)  lane-dense output row
    """
    out_ref = refs[-1]
    params = refs[:-1]

    x = x_ref[...]        # (BN, F0), already f32 compute dtype (no astype)
    avg = avg_ref[...]    # (B, BN)
    exp = exp_ref[...]    # (BN, B)

    for i in range(NUM_LAYERS):
        wsum_t = params[3 * i + 0][...]   # (Fin, Fout)
        wl_t = params[3 * i + 1][...]     # (Fin, Fout)
        bsum = params[3 * i + 2][...]     # (1, Fout)

        # Folded DeepSetLayer: x@(Wg+Wl)^T + (bg+bl) - mean@Wl^T, then ReLU.
        main = jnp.dot(x, wsum_t, preferred_element_type=jnp.float32)       # (BN, Fout)
        mean_b = jnp.dot(avg, x, preferred_element_type=jnp.float32)        # (B,  Fin)  set mean on MXU
        corr = jnp.dot(mean_b, wl_t, preferred_element_type=jnp.float32)    # (B,  Fout) tiny correction
        corr_full = jnp.dot(exp, corr, preferred_element_type=jnp.float32)  # (BN, Fout) broadcast back
        x = jnp.maximum(main + bsum - corr_full, 0.0)                       # ReLU

    # x.mean(dim=1) -> (B, F_last), then Linear(F_last, 1) + ReLU written as a
    # (1,F)x(B,F) contraction so the result lands lane-dense as (1, B).
    pooled = jnp.dot(avg, x, preferred_element_type=jnp.float32)            # (B, F_last)
    wfin = params[3 * NUM_LAYERS + 0][...]                                  # (1, F_last)
    bfin = params[3 * NUM_LAYERS + 1][...]                                  # (1, 1)
    y = lax.dot_general(wfin, pooled, (((1,), (1,)), ((), ())),
                        preferred_element_type=jnp.float32) + bfin          # (1, B)
    out_ref[...] = jnp.maximum(y, 0.0)


def deepset_forward(x, params):
    """x: (B, N, F0); params: flat list in torch layout (W:(out,in), b:(1,out))."""
    B, N, F0 = x.shape
    BN = B * N

    # Glue (plain XLA, outside the kernel): fold gamma/Lambda weights & biases,
    # flatten the set dimension once, and build constant per-set averaging /
    # broadcast matrices so the kernel does zero reshapes.
    set_id = jnp.arange(BN, dtype=jnp.int32) // N
    exp_mat = (set_id[:, None] == jnp.arange(B, dtype=jnp.int32)[None, :]).astype(jnp.float32)  # (BN, B)
    avg_mat = exp_mat.T / float(N)                                                              # (B, BN)

    # Kept f32; if the model scales on v6e/v7x, cast weights + activations to
    # bf16 for the matmuls (keep preferred_element_type=f32) for MXU rate.
    kernel_args = [x.reshape(BN, F0).astype(jnp.float32), avg_mat, exp_mat]

    flops = 0
    for i in range(NUM_LAYERS):
        wg, bg, wl, bl = params[4 * i: 4 * i + 4]
        f_out, f_in = wg.shape
        kernel_args += [(wg + wl).T, wl.T, bg + bl]
        flops += 2 * BN * f_in * f_out      # folded main matmul
        flops += 2 * B * BN * f_in          # set mean (MXU)
        flops += 2 * B * f_in * f_out       # mean correction
        flops += 2 * BN * B * f_out         # correction broadcast
        flops += 3 * BN * f_out             # bias add, subtract, relu
    wfin, bfin = params[-2], params[-1]
    f_last = wfin.shape[1]
    kernel_args += [wfin, bfin]
    flops += 2 * B * BN * f_last + 2 * B * f_last + 2 * B

    bytes_accessed = sum(int(a.size) * 4 for a in kernel_args) + B * 4
    cost = pl.CostEstimate(flops=int(flops), transcendentals=0,
                           bytes_accessed=int(bytes_accessed))

    n_in = len(kernel_args)
    # Gridless single program: all operands live in VMEM for the whole call.
    # (A batch grid with dimension_semantics=("parallel",) and constant
    # index_maps for the weights is the right move once B*N is large — at
    # B=2 the per-step pipeline overhead would dominate.)
    out = pl.pallas_call(
        deepset_kernel,
        out_shape=jax.ShapeDtypeStruct((1, B), jnp.float32),
        in_specs=[pl.BlockSpec(memory_space=pltpu.MemorySpace.VMEM)] * n_in,
        out_specs=pl.BlockSpec(memory_space=pltpu.MemorySpace.VMEM),
        cost_estimate=cost,
    )(*kernel_args)
    return out.reshape(-1)                  # .view(-1)


def init_params(key, feats):
    """Deterministic init mimicking torch.nn.Linear default (uniform +-1/sqrt(fan_in))."""
    params = []
    keys = jax.random.split(key, 4 * NUM_LAYERS + 2)
    k = 0
    for i in range(NUM_LAYERS):
        f_in, f_out = feats[i], feats[i + 1]
        bound = 1.0 / float(f_in) ** 0.5
        # gamma Linear
        params.append(jax.random.uniform(keys[k], (f_out, f_in), jnp.float32, -bound, bound)); k += 1
        params.append(jax.random.uniform(keys[k], (1, f_out), jnp.float32, -bound, bound)); k += 1
        # Lambda Linear
        params.append(jax.random.uniform(keys[k], (f_out, f_in), jnp.float32, -bound, bound)); k += 1
        params.append(jax.random.uniform(keys[k], (1, f_out), jnp.float32, -bound, bound)); k += 1
    f_in = feats[NUM_LAYERS]
    bound = 1.0 / float(f_in) ** 0.5
    params.append(jax.random.uniform(keys[k], (1, f_in), jnp.float32, -bound, bound)); k += 1
    params.append(jax.random.uniform(keys[k], (1, 1), jnp.float32, -bound, bound))
    return params


def ref_forward(x, params):
    """Pure-JAX reference (mirrors the PyTorch forward with norm='none', pool='mean')."""
    for i in range(NUM_LAYERS):
        wg, bg, wl, bl = params[4 * i: 4 * i + 4]
        mean = x.mean(axis=1, keepdims=True)
        out = x @ wg.T + bg + (x - mean) @ wl.T + bl
        x = jnp.maximum(out, 0.0)
    wfin, bfin = params[-2], params[-1]
    pooled = x.mean(axis=1)
    return jnp.maximum(pooled @ wfin.T + bfin, 0.0).reshape(-1)


if __name__ == "__main__":
    feats = [4, 32, 32, 32, 32]   # feats[0] = input features, 4 DeepSet layers
    B, N = 2, 8                   # batch, set size

    key = jax.random.PRNGKey(0)
    kx, kp = jax.random.split(key)
    x = jax.random.normal(kx, (B, N, feats[0]), dtype=jnp.float32)
    params = init_params(kp, feats)

    out = deepset_forward(x, params)
    jax.block_until_ready(out)

    ref = ref_forward(x, params)
    assert out.shape == (B,), out.shape
    # Note: the gamma/Lambda fold reassociates FP sums -> ~1e-6 level differences,
    # well within tolerance.
    assert jnp.allclose(out, ref, atol=1e-4, rtol=1e-4), (out, ref)

    print("KERNEL_OK")
</pallas_src>

<mosaic_0001>
module attributes {stable_mosaic.version = 11 : i64} {
  func.func @deepset_kernel(%arg0: memref<16x4xf32, #tpu.memory_space<vmem>>, %arg1: memref<2x16xf32, #tpu.memory_space<vmem>>, %arg2: memref<16x2xf32, #tpu.memory_space<vmem>>, %arg3: memref<4x32xf32, #tpu.memory_space<vmem>>, %arg4: memref<4x32xf32, #tpu.memory_space<vmem>>, %arg5: memref<1x32xf32, #tpu.memory_space<vmem>>, %arg6: memref<32x32xf32, #tpu.memory_space<vmem>>, %arg7: memref<32x32xf32, #tpu.memory_space<vmem>>, %arg8: memref<1x32xf32, #tpu.memory_space<vmem>>, %arg9: memref<32x32xf32, #tpu.memory_space<vmem>>, %arg10: memref<32x32xf32, #tpu.memory_space<vmem>>, %arg11: memref<1x32xf32, #tpu.memory_space<vmem>>, %arg12: memref<32x32xf32, #tpu.memory_space<vmem>>, %arg13: memref<32x32xf32, #tpu.memory_space<vmem>>, %arg14: memref<1x32xf32, #tpu.memory_space<vmem>>, %arg15: memref<1x32xf32, #tpu.memory_space<vmem>>, %arg16: memref<1x1xf32, #tpu.memory_space<vmem>>, %arg17: memref<1x2xf32, #tpu.memory_space<vmem>>) attributes {dimension_semantics = [], scalar_prefetch = 0 : i64, scratch_operands = 0 : i64, tpu.core_type = #tpu.core_type<tc>} {
    %c0 = arith.constant 0 : index
    %c0_0 = arith.constant 0 : index
    %0 = vector.load %arg0[%c0, %c0_0] : memref<16x4xf32, #tpu.memory_space<vmem>>, vector<16x4xf32>
    %c0_1 = arith.constant 0 : index
    %c0_2 = arith.constant 0 : index
    %1 = vector.load %arg1[%c0_1, %c0_2] : memref<2x16xf32, #tpu.memory_space<vmem>>, vector<2x16xf32>
    %c0_3 = arith.constant 0 : index
    %c0_4 = arith.constant 0 : index
    %2 = vector.load %arg2[%c0_3, %c0_4] : memref<16x2xf32, #tpu.memory_space<vmem>>, vector<16x2xf32>
    %c0_5 = arith.constant 0 : index
    %c0_6 = arith.constant 0 : index
    %3 = vector.load %arg3[%c0_5, %c0_6] : memref<4x32xf32, #tpu.memory_space<vmem>>, vector<4x32xf32>
    %c0_7 = arith.constant 0 : index
    %c0_8 = arith.constant 0 : index
    %4 = vector.load %arg4[%c0_7, %c0_8] : memref<4x32xf32, #tpu.memory_space<vmem>>, vector<4x32xf32>
    %c0_9 = arith.constant 0 : index
    %c0_10 = arith.constant 0 : index
    %5 = vector.load %arg5[%c0_9, %c0_10] : memref<1x32xf32, #tpu.memory_space<vmem>>, vector<1x32xf32>
    %cst = arith.constant dense<0.000000e+00> : vector<16x32xf32>
    %6 = tpu.matmul %0, %3, %cst {dimension_numbers = #tpu.dot_dimension_numbers<[1], [0], [0], [1], [0, 0, 1, 1], [], []>} : vector<16x4xf32>, vector<4x32xf32>, vector<16x32xf32> -> vector<16x32xf32>
    %cst_11 = arith.constant dense<0.000000e+00> : vector<2x4xf32>
    %7 = tpu.matmul %1, %0, %cst_11 {dimension_numbers = #tpu.dot_dimension_numbers<[1], [0], [0], [1], [0, 0, 1, 1], [], []>} : vector<2x16xf32>, vector<16x4xf32>, vector<2x4xf32> -> vector<2x4xf32>
    %cst_12 = arith.constant dense<0.000000e+00> : vector<2x32xf32>
    %8 = tpu.matmul %7, %4, %cst_12 {dimension_numbers = #tpu.dot_dimension_numbers<[1], [0], [0], [1], [0, 0, 1, 1], [], []>} : vector<2x4xf32>, vector<4x32xf32>, vector<2x32xf32> -> vector<2x32xf32>
    %cst_13 = arith.constant dense<0.000000e+00> : vector<16x32xf32>
    %9 = tpu.matmul %2, %8, %cst_13 {dimension_numbers = #tpu.dot_dimension_numbers<[1], [0], [0], [1], [0, 0, 1, 1], [], []>} : vector<16x2xf32>, vector<2x32xf32>, vector<16x32xf32> -> vector<16x32xf32>
    %10 = vector.broadcast %5 : vector<1x32xf32> to vector<16x32xf32>
    %11 = arith.addf %6, %10 : vector<16x32xf32>
    %12 = arith.subf %11, %9 : vector<16x32xf32>
    %cst_14 = arith.constant 0.000000e+00 : f32
    %13 = vector.broadcast %cst_14 : f32 to vector<16x32xf32>
    %14 = arith.maximumf %12, %13 : vector<16x32xf32>
    %c0_15 = arith.constant 0 : index
    %c0_16 = arith.constant 0 : index
    %15 = vector.load %arg6[%c0_15, %c0_16] : memref<32x32xf32, #tpu.memory_space<vmem>>, vector<32x32xf32>
    %c0_17 = arith.constant 0 : index
    %c0_18 = arith.constant 0 : index
    %16 = vector.load %arg7[%c0_17, %c0_18] : memref<32x32xf32, #tpu.memory_space<vmem>>, vector<32x32xf32>
    %c0_19 = arith.constant 0 : index
    %c0_20 = arith.constant 0 : index
    %17 = vector.load %arg8[%c0_19, %c0_20] : memref<1x32xf32, #tpu.memory_space<vmem>>, vector<1x32xf32>
    %cst_21 = arith.constant dense<0.000000e+00> : vector<16x32xf32>
    %18 = tpu.matmul %14, %15, %cst_21 {dimension_numbers = #tpu.dot_dimension_numbers<[1], [0], [0], [1], [0, 0, 1, 1], [], []>} : vector<16x32xf32>, vector<32x32xf32>, vector<16x32xf32> -> vector<16x32xf32>
    %cst_22 = arith.constant dense<0.000000e+00> : vector<2x32xf32>
    %19 = tpu.matmul %1, %14, %cst_22 {dimension_numbers = #tpu.dot_dimension_numbers<[1], [0], [0], [1], [0, 0, 1, 1], [], []>} : vector<2x16xf32>, vector<16x32xf32>, vector<2x32xf32> -> vector<2x32xf32>
    %cst_23 = arith.constant dense<0.000000e+00> : vector<2x32xf32>
    %20 = tpu.matmul %19, %16, %cst_23 {dimension_numbers = #tpu.dot_dimension_numbers<[1], [0], [0], [1], [0, 0, 1, 1], [], []>} : vector<2x32xf32>, vector<32x32xf32>, vector<2x32xf32> -> vector<2x32xf32>
    %cst_24 = arith.constant dense<0.000000e+00> : vector<16x32xf32>
    %21 = tpu.matmul %2, %20, %cst_24 {dimension_numbers = #tpu.dot_dimension_numbers<[1], [0], [0], [1], [0, 0, 1, 1], [], []>} : vector<16x2xf32>, vector<2x32xf32>, vector<16x32xf32> -> vector<16x32xf32>
    %22 = vector.broadcast %17 : vector<1x32xf32> to vector<16x32xf32>
    %23 = arith.addf %18, %22 : vector<16x32xf32>
    %24 = arith.subf %23, %21 : vector<16x32xf32>
    %cst_25 = arith.constant 0.000000e+00 : f32
    %25 = vector.broadcast %cst_25 : f32 to vector<16x32xf32>
    %26 = arith.maximumf %24, %25 : vector<16x32xf32>
    %c0_26 = arith.constant 0 : index
    %c0_27 = arith.constant 0 : index
    %27 = vector.load %arg9[%c0_26, %c0_27] : memref<32x32xf32, #tpu.memory_space<vmem>>, vector<32x32xf32>
    %c0_28 = arith.constant 0 : index
    %c0_29 = arith.constant 0 : index
    %28 = vector.load %arg10[%c0_28, %c0_29] : memref<32x32xf32, #tpu.memory_space<vmem>>, vector<32x32xf32>
    %c0_30 = arith.constant 0 : index
    %c0_31 = arith.constant 0 : index
    %29 = vector.load %arg11[%c0_30, %c0_31] : memref<1x32xf32, #tpu.memory_space<vmem>>, vector<1x32xf32>
    %cst_32 = arith.constant dense<0.000000e+00> : vector<16x32xf32>
    %30 = tpu.matmul %26, %27, %cst_32 {dimension_numbers = #tpu.dot_dimension_numbers<[1], [0], [0], [1], [0, 0, 1, 1], [], []>} : vector<16x32xf32>, vector<32x32xf32>, vector<16x32xf32> -> vector<16x32xf32>
    %cst_33 = arith.constant dense<0.000000e+00> : vector<2x32xf32>
    %31 = tpu.matmul %1, %26, %cst_33 {dimension_numbers = #tpu.dot_dimension_numbers<[1], [0], [0], [1], [0, 0, 1, 1], [], []>} : vector<2x16xf32>, vector<16x32xf32>, vector<2x32xf32> -> vector<2x32xf32>
    %cst_34 = arith.constant dense<0.000000e+00> : vector<2x32xf32>
    %32 = tpu.matmul %31, %28, %cst_34 {dimension_numbers = #tpu.dot_dimension_numbers<[1], [0], [0], [1], [0, 0, 1, 1], [], []>} : vector<2x32xf32>, vector<32x32xf32>, vector<2x32xf32> -> vector<2x32xf32>
    %cst_35 = arith.constant dense<0.000000e+00> : vector<16x32xf32>
    %33 = tpu.matmul %2, %32, %cst_35 {dimension_numbers = #tpu.dot_dimension_numbers<[1], [0], [0], [1], [0, 0, 1, 1], [], []>} : vector<16x2xf32>, vector<2x32xf32>, vector<16x32xf32> -> vector<16x32xf32>
    %34 = vector.broadcast %29 : vector<1x32xf32> to vector<16x32xf32>
    %35 = arith.addf %30, %34 : vector<16x32xf32>
    %36 = arith.subf %35, %33 : vector<16x32xf32>
    %cst_36 = arith.constant 0.000000e+00 : f32
    %37 = vector.broadcast %cst_36 : f32 to vector<16x32xf32>
    %38 = arith.maximumf %36, %37 : vector<16x32xf32>
    %c0_37 = arith.constant 0 : index
    %c0_38 = arith.constant 0 : index
    %39 = vector.load %arg12[%c0_37, %c0_38] : memref<32x32xf32, #tpu.memory_space<vmem>>, vector<32x32xf32>
    %c0_39 = arith.constant 0 : index
    %c0_40 = arith.constant 0 : index
    %40 = vector.load %arg13[%c0_39, %c0_40] : memref<32x32xf32, #tpu.memory_space<vmem>>, vector<32x32xf32>
    %c0_41 = arith.constant 0 : index
    %c0_42 = arith.constant 0 : index
    %41 = vector.load %arg14[%c0_41, %c0_42] : memref<1x32xf32, #tpu.memory_space<vmem>>, vector<1x32xf32>
    %cst_43 = arith.constant dense<0.000000e+00> : vector<16x32xf32>
    %42 = tpu.matmul %38, %39, %cst_43 {dimension_numbers = #tpu.dot_dimension_numbers<[1], [0], [0], [1], [0, 0, 1, 1], [], []>} : vector<16x32xf32>, vector<32x32xf32>, vector<16x32xf32> -> vector<16x32xf32>
    %cst_44 = arith.constant dense<0.000000e+00> : vector<2x32xf32>
    %43 = tpu.matmul %1, %38, %cst_44 {dimension_numbers = #tpu.dot_dimension_numbers<[1], [0], [0], [1], [0, 0, 1, 1], [], []>} : vector<2x16xf32>, vector<16x32xf32>, vector<2x32xf32> -> vector<2x32xf32>
    %cst_45 = arith.constant dense<0.000000e+00> : vector<2x32xf32>
    %44 = tpu.matmul %43, %40, %cst_45 {dimension_numbers = #tpu.dot_dimension_numbers<[1], [0], [0], [1], [0, 0, 1, 1], [], []>} : vector<2x32xf32>, vector<32x32xf32>, vector<2x32xf32> -> vector<2x32xf32>
    %cst_46 = arith.constant dense<0.000000e+00> : vector<16x32xf32>
    %45 = tpu.matmul %2, %44, %cst_46 {dimension_numbers = #tpu.dot_dimension_numbers<[1], [0], [0], [1], [0, 0, 1, 1], [], []>} : vector<16x2xf32>, vector<2x32xf32>, vector<16x32xf32> -> vector<16x32xf32>
    %46 = vector.broadcast %41 : vector<1x32xf32> to vector<16x32xf32>
    %47 = arith.addf %42, %46 : vector<16x32xf32>
    %48 = arith.subf %47, %45 : vector<16x32xf32>
    %cst_47 = arith.constant 0.000000e+00 : f32
    %49 = vector.broadcast %cst_47 : f32 to vector<16x32xf32>
    %50 = arith.maximumf %48, %49 : vector<16x32xf32>
    %cst_48 = arith.constant dense<0.000000e+00> : vector<2x32xf32>
    %51 = tpu.matmul %1, %50, %cst_48 {dimension_numbers = #tpu.dot_dimension_numbers<[1], [0], [0], [1], [0, 0, 1, 1], [], []>} : vector<2x16xf32>, vector<16x32xf32>, vector<2x32xf32> -> vector<2x32xf32>
    %c0_49 = arith.constant 0 : index
    %c0_50 = arith.constant 0 : index
    %52 = vector.load %arg15[%c0_49, %c0_50] : memref<1x32xf32, #tpu.memory_space<vmem>>, vector<1x32xf32>
    %c0_51 = arith.constant 0 : index
    %c0_52 = arith.constant 0 : index
    %53 = vector.load %arg16[%c0_51, %c0_52] : memref<1x1xf32, #tpu.memory_space<vmem>>, vector<1x1xf32>
    %cst_53 = arith.constant dense<0.000000e+00> : vector<1x2xf32>
    %54 = tpu.matmul %52, %51, %cst_53 {dimension_numbers = #tpu.dot_dimension_numbers<[1], [1], [0], [0], [0, 0, 1, 0], [], []>} : vector<1x32xf32>, vector<2x32xf32>, vector<1x2xf32> -> vector<1x2xf32>
    %55 = vector.broadcast %53 : vector<1x1xf32> to vector<1x2xf32>
    %56 = arith.addf %54, %55 : vector<1x2xf32>
    %cst_54 = arith.constant 0.000000e+00 : f32
    %57 = vector.broadcast %cst_54 : f32 to vector<1x2xf32>
    %58 = arith.maximumf %56, %57 : vector<1x2xf32>
    %c0_55 = arith.constant 0 : index
    %c0_56 = arith.constant 0 : index
    %59 = vector.load %arg17[%c0_55, %c0_56] : memref<1x2xf32, #tpu.memory_space<vmem>>, vector<1x2xf32>
    tpu.vector_store %arg17[%c0_55, %c0_56], %58 {strides = array<i32>} : memref<1x2xf32, #tpu.memory_space<vmem>>, vector<1x2xf32>,
    return
  }
}

</mosaic_0001>

<bundles_post_ra>
// kernel: tpu_custom_call.1
= control target key start
LH: loop header
LB: loop body
LE: loop exit
PB: predicated region body
PF: predicated region fallthrough
CT: control target
= control target key end

     0   :  { %s2540_s0 = inlined_call_operand.vmem [shape: f32[16,4], index: 0, kind: input, shape index: {}]   ;;  %s2541_s1 = inlined_call_operand.hbm [shape: f32[2,16], index: 1, kind: input, shape index: {}]   ;;  %s2542_s2 = inlined_call_operand.vmem [shape: f32[16,2], index: 2, kind: input, shape index: {}]   ;;  %s2543_s3 = inlined_call_operand.hbm [shape: f32[4,32], index: 3, kind: input, shape index: {}]   ;;  %s2544_s4 = inlined_call_operand.hbm [shape: f32[4,32], index: 4, kind: input, shape index: {}]   ;;  %s2545_s5 = inlined_call_operand.hbm [shape: f32[1,32], index: 5, kind: input, shape index: {}]   ;;  %s2546_s6 = inlined_call_operand.vmem [shape: f32[32,32], index: 6, kind: input, shape index: {}]   ;;  %s2547_s7 = inlined_call_operand.vmem [shape: f32[32,32], index: 7, kind: input, shape index: {}]   ;;  %s2548_s8 = inlined_call_operand.vmem [shape: f32[1,32], index: 8, kind: input, shape index: {}]   ;;  %s2549_s9 = inlined_call_operand.hbm [shape: f32[32,32], index: 9, kind: input, shape index: {}]   ;;  %s2550_s10 = inlined_call_operand.hbm [shape: f32[32,32], index: 10, kind: input, shape index: {}]   ;;  %s2551_s11 = inlined_call_operand.vmem [shape: f32[1,32], index: 11, kind: input, shape index: {}]   ;;  %s2552_s12 = inlined_call_operand.hbm [shape: f32[32,32], index: 12, kind: input, shape index: {}]   ;;  %s2553_s13 = inlined_call_operand.hbm [shape: f32[32,32], index: 13, kind: input, shape index: {}]   ;;  %s2554_s14 = inlined_call_operand.vmem [shape: f32[1,32], index: 14, kind: input, shape index: {}]   ;;  %s2555_s15 = inlined_call_operand.vmem [shape: f32[1,32], index: 15, kind: input, shape index: {}]   ;;  %s2556_s16 = inlined_call_operand.<no memory space> [shape: f32[1,1], index: 16, kind: input, shape index: {}]   ;;  %s2557_s17 = inlined_call_operand.hbm [shape: f32[1,2], index: 17, kind: output, shape index: {}]  }
   0x1   :  { %2560 = sst [smem:[#allocation24_spill]] %s2540_s0  ;;  %v22_v0 = vstv %s2556_s16 }
   0x2   :  { %2561 = sst [smem:[#allocation25_spill]] %s2541_s1  ;;  %23 = vst [vmem:[#allocation2] sm:$0x1] %v22_v0 }
   0x3   :  { %24 = vsyncpa [#allocation4], 0 }
   0x4   :  { %25 = vsyncpa [#allocation7], 0 }
   0x5   :  { %26 = vsyncpa [#allocation10], 0 }
   0x6   :  { %27 = vsyncpa [#allocation13], 0 }
   0x7   :  { %28 = vsyncpa [#allocation16], 0 }
   0x8   :  { %29 = vsyncpa [#allocation5], 0  ;;  %s2166_s26 = smov [#allocation6]   ;;  %s2167_s28 = smov [#allocation9]  }
   0x9   :  { %s50_s27 = sshll.u32 %s2166_s26, 4  ;;  %s70_s29 = sshll.u32 %s2167_s28, 4  ;;  %s51_s27 = int_to_ptr.vmem [resolvable:$true] %s50_s27  ;;  %s71_s29 = int_to_ptr.vmem [resolvable:$true] %s70_s29 }
   0xa   :  { %s1956_s18 = scalar_lea.hbm %s2543_s3, 64 }
   0xb   :  { %p1957_p0 = scmp.ne.s32.totalorder %s2543_s3, %s1956_s18  ;;  %p1960_p1 = scmp.lt.u32.totalorder %s1956_s18, %s2543_s3 }
   0xd   :  { %p1962_p2 = pnand %p1960_p1, %p1957_p0 }
   0xf   :  { %1965 = shalt.err (!%p1962_p2)
}
  0x10   :  { %s1966_s21 = scalar_lea.vmem %s51_s27, 64  ;;  %p1971_p4 = scmp.lt.s32.totalorder %s51_s27, %s51_s27 }
  0x11   :  { %p1967_p3 = scmp.ne.s32.totalorder %s51_s27, %s1966_s21  ;;  %p1972_p5 = scmp.lt.s32.totalorder %s1966_s21, %s1966_s21 }
  0x13   :  { %p1973_p6 = por %p1972_p5, %p1971_p4 }
  0x15   :  { %p1974_p7 = pnand %p1973_p6, %p1967_p3 }
  0x17   :  { %1977 = shalt.err (!%p1974_p7)
}
  0x18   :  { %53 = dma.hbm_to_vmem [thread:$0]  %s2543_s3, 64, %s51_s27, [#allocation7]  }
  0x19   :  { %s1978_s26 = scalar_lea.hbm %s2545_s5, 16 }
  0x1a   :  { %p1979_p8 = scmp.ne.s32.totalorder %s2545_s5, %s1978_s26  ;;  %p1982_p9 = scmp.lt.u32.totalorder %s1978_s26, %s2545_s5 }
  0x1c   :  { %p1984_p10 = pnand %p1982_p9, %p1979_p8 }
  0x1e   :  { %1987 = shalt.err (!%p1984_p10)
}
  0x1f   :  { %s1988_s19 = scalar_lea.vmem %s71_s29, 16  ;;  %s1992_s1 = scalar_lea.vmem %s71_s29, 32 }
  0x20   :  { %p1989_p11 = scmp.ne.s32.totalorder %s71_s29, %s1988_s19  ;;  %p1993_p12 = scmp.lt.s32.totalorder %s71_s29, %s71_s29 }
  0x21   :  { %p1994_p13 = scmp.lt.s32.totalorder %s1992_s1, %s1988_s19 }
  0x23   :  { %p1995_p0 = por %p1994_p13, %p1993_p12 }
  0x25   :  { %p1996_p1 = pnand %p1995_p0, %p1989_p11 }
  0x27   :  { %1999 = shalt.err (!%p1996_p1)
}
  0x28   :  { %73 = dma.hbm_to_vmem [thread:$0]  %s2545_s5, 16, %s71_s29, [#allocation10]  }
  0x29   :  { %s2168_s16 = smov [#allocation12]   ;;  %s2169_s21 = smov [#allocation3]  }
  0x2a   :  { %s97_s20 = sshll.u32 %s2168_s16, 4  ;;  %s38_s22 = sshll.u32 %s2169_s21, 4  ;;  %s98_s20 = int_to_ptr.vmem [resolvable:$true] %s97_s20  ;;  %s39_s22 = int_to_ptr.vmem [resolvable:$true] %s38_s22 }
  0x2b   :  { %s2000_s25 = scalar_lea.hbm %s2550_s10, 512 }
  0x2c   :  { %p2001_p2 = scmp.ne.s32.totalorder %s2550_s10, %s2000_s25  ;;  %p2004_p3 = scmp.lt.u32.totalorder %s2000_s25, %s2550_s10 }
  0x2e   :  { %p2006_p4 = pnand %p2004_p3, %p2001_p2 }
  0x30   :  { %2009 = shalt.err (!%p2006_p4)
}
  0x31   :  { %s2010_s5 = scalar_lea.vmem %s98_s20, 512  ;;  %p2015_p6 = scmp.lt.s32.totalorder %s98_s20, %s98_s20 }
  0x32   :  { %p2011_p5 = scmp.ne.s32.totalorder %s98_s20, %s2010_s5  ;;  %p2016_p7 = scmp.lt.s32.totalorder %s2010_s5, %s2010_s5 }
  0x34   :  { %p2017_p8 = por %p2016_p7, %p2015_p6 }
  0x36   :  { %p2018_p9 = pnand %p2017_p8, %p2011_p5 }
  0x38   :  { %2021 = shalt.err (!%p2018_p9)
}
  0x39   :  { %s2170_s29 = smov 128   ;;  %s2171_s18 = smov 8  }
  0x3a   :  { %103 = dma.hbm_to_vmem [thread:$0]  %s2550_s10, 512, %s98_s20, [#allocation13], %s2170_s29, %s2170_s29, %s2171_s18  }
  0x3b   :  { %s2562_s16 = sld [smem:[#allocation25_spill]] }
  0x41   :  { %s2022_s21 = scalar_lea.hbm %s2562_s16, 32 }
  0x42   :  { %p2023_p10 = scmp.ne.s32.totalorder %s2562_s16, %s2022_s21  ;;  %p2026_p11 = scmp.lt.u32.totalorder %s2022_s21, %s2562_s16 }
  0x44   :  { %p2028_p12 = pnand %p2026_p11, %p2023_p10 }
  0x46   :  { %2031 = shalt.err (!%p2028_p12)
}
  0x47   :  { %s2032_s28 = scalar_lea.vmem %s39_s22, 32  ;;  %p2037_p0 = scmp.lt.s32.totalorder %s39_s22, %s39_s22 }
  0x48   :  { %p2033_p13 = scmp.ne.s32.totalorder %s39_s22, %s2032_s28  ;;  %p2038_p1 = scmp.lt.s32.totalorder %s2032_s28, %s2032_s28 }
  0x4a   :  { %p2039_p2 = por %p2038_p1, %p2037_p0 }
  0x4c   :  { %p2040_p3 = pnand %p2039_p2, %p2033_p13 }
  0x4e   :  { %2043 = shalt.err (!%p2040_p3)
}
  0x4f   :  { %41 = dma.hbm_to_vmem [thread:$0]  %s2562_s16, 32, %s39_s22, [#allocation4]  }
  0x50   :  { %s2172_s0 = smov [#allocation8]   ;;  %s2173_s5 = smov [#allocation11]  }
  0x51   :  { %s60_s30 = sshll.u32 %s2172_s0, 4  ;;  %s85_s19 = sshll.u32 %s2173_s5, 4  ;;  %s61_s30 = int_to_ptr.vmem [resolvable:$true] %s60_s30  ;;  %s2325_s19 = int_to_ptr.vmem [resolvable:$true] %s85_s19 }
  0x52   :  { %s2044_s27 = scalar_lea.hbm %s2544_s4, 64 }
  0x53   :  { %p2045_p4 = scmp.ne.s32.totalorder %s2544_s4, %s2044_s27  ;;  %p2048_p5 = scmp.lt.u32.totalorder %s2044_s27, %s2544_s4 }
  0x55   :  { %p2050_p6 = pnand %p2048_p5, %p2045_p4 }
  0x57   :  { %2053 = shalt.err (!%p2050_p6)
}
  0x58   :  { %s2054_s22 = scalar_lea.vmem %s61_s30, 64  ;;  %p2059_p8 = scmp.lt.s32.totalorder %s61_s30, %s61_s30 }
  0x59   :  { %p2055_p7 = scmp.ne.s32.totalorder %s61_s30, %s2054_s22  ;;  %p2060_p9 = scmp.lt.s32.totalorder %s2054_s22, %s2054_s22 }
  0x5b   :  { %p2061_p10 = por %p2060_p9, %p2059_p8 }
  0x5d   :  { %p2062_p11 = pnand %p2061_p10, %p2055_p7 }
  0x5f   :  { %2065 = shalt.err (!%p2062_p11)
}
  0x60   :  { %63 = dma.hbm_to_vmem [thread:$0]  %s2544_s4, 64, %s61_s30, [#allocation7]  }
  0x61   :  { %s2066_s20 = scalar_lea.hbm %s2549_s9, 512 }
  0x62   :  { %p2067_p12 = scmp.ne.s32.totalorder %s2549_s9, %s2066_s20  ;;  %p2070_p13 = scmp.lt.u32.totalorder %s2066_s20, %s2549_s9 }
  0x64   :  { %p2072_p0 = pnand %p2070_p13, %p2067_p12 }
  0x66   :  { %2075 = shalt.err (!%p2072_p0)
}
  0x67   :  { %s2076_s27 = scalar_lea.vmem %s2325_s19, 512  ;;  %p2081_p2 = scmp.lt.s32.totalorder %s2325_s19, %s2325_s19 }
  0x68   :  { %p2077_p1 = scmp.ne.s32.totalorder %s2325_s19, %s2076_s27  ;;  %p2082_p3 = scmp.lt.s32.totalorder %s2076_s27, %s2076_s27 }
  0x6a   :  { %p2083_p4 = por %p2082_p3, %p2081_p2 }
  0x6c   :  { %p2084_p5 = pnand %p2083_p4, %p2077_p1 }
  0x6e   :  { %2087 = shalt.err (!%p2084_p5)
}
  0x6f   :  { %91 = dma.hbm_to_vmem [thread:$0]  %s2549_s9, 512, %s2325_s19, [#allocation10], %s2170_s29, %s2170_s29, %s2171_s18  }
  0x70   :  { %s2174_s21 = smov [#allocation14]   ;;  %s2175_s24 = smov [#allocation15]  }
  0x71   :  { %s111_s23 = sshll.u32 %s2174_s21, 4  ;;  %s123_s25 = sshll.u32 %s2175_s24, 4  ;;  %s112_s23 = int_to_ptr.vmem [resolvable:$true] %s111_s23  ;;  %s2359_s25 = int_to_ptr.vmem [resolvable:$true] %s123_s25 }
  0x72   :  { %s2088_s26 = scalar_lea.hbm %s2552_s12, 512 }
  0x73   :  { %p2089_p6 = scmp.ne.s32.totalorder %s2552_s12, %s2088_s26  ;;  %p2092_p7 = scmp.lt.u32.totalorder %s2088_s26, %s2552_s12 }
  0x75   :  { %p2094_p8 = pnand %p2092_p7, %p2089_p6 }
  0x77   :  { %2097 = shalt.err (!%p2094_p8)
}
  0x78   :  { %s2098_s9 = scalar_lea.vmem %s112_s23, 512  ;;  %p2103_p10 = scmp.lt.s32.totalorder %s112_s23, %s112_s23 }
  0x79   :  { %p2099_p9 = scmp.ne.s32.totalorder %s112_s23, %s2098_s9  ;;  %p2104_p11 = scmp.lt.s32.totalorder %s2098_s9, %s2098_s9 }
  0x7b   :  { %p2105_p12 = por %p2104_p11, %p2103_p10 }
  0x7d   :  { %p2106_p13 = pnand %p2105_p12, %p2099_p9 }
  0x7f   :  { %2109 = shalt.err (!%p2106_p13)
}
  0x80   :  { %117 = dma.hbm_to_vmem [thread:$0]  %s2552_s12, 512, %s112_s23, [#allocation13], %s2170_s29, %s2170_s29, %s2171_s18  }
  0x81   :  { %s2110_s27 = scalar_lea.hbm %s2553_s13, 512 }
  0x82   :  { %p2111_p0 = scmp.ne.s32.totalorder %s2553_s13, %s2110_s27  ;;  %p2114_p1 = scmp.lt.u32.totalorder %s2110_s27, %s2553_s13 }
  0x84   :  { %p2116_p2 = pnand %p2114_p1, %p2111_p0 }
  0x86   :  { %2119 = shalt.err (!%p2116_p2)
}
  0x87   :  { %s2120_s22 = scalar_lea.vmem %s2359_s25, 512  ;;  %p2125_p4 = scmp.lt.s32.totalorder %s2359_s25, %s2359_s25 }
  0x88   :  { %p2121_p3 = scmp.ne.s32.totalorder %s2359_s25, %s2120_s22  ;;  %p2126_p5 = scmp.lt.s32.totalorder %s2120_s22, %s2120_s22 }
  0x8a   :  { %p2127_p6 = por %p2126_p5, %p2125_p4 }
  0x8c   :  { %p2128_p7 = pnand %p2127_p6, %p2121_p3 }
  0x8e   :  { %2131 = shalt.err (!%p2128_p7)
}
  0x8f   :  { %129 = dma.hbm_to_vmem [thread:$0]  %s2553_s13, 512, %s2359_s25, [#allocation16], %s2170_s29, %s2170_s29, %s2171_s18  }
  0x90   :  { %2154 = dma.done.wait [#allocation4], 32  }
  0x91   :  { %2155 = vsyncadd [#allocation4], 4294967264 }
  0x92   :  { %2156 = dma.done.wait [#allocation7], 128  }
  0x93   :  { %2157 = vsyncadd [#allocation7], 4294967168 }
  0x94   :  { %2158 = dma.done.wait [#allocation10], 528  }
  0x95   :  { %2159 = vsyncadd [#allocation10], 4294966768 }
  0x96   :  { %2160 = dma.done.wait [#allocation13], 1024  }
  0x97   :  { %2161 = vsyncadd [#allocation13], 4294966272 }
  0x98   :  { %2162 = dma.done.wait [#allocation16], 512  }
  0x99   :  { %2163 = vsyncadd [#allocation16], 4294966784  ;;  %v2176_v1 = vmov 0.0|0.0   ;;  %vm2177_vm0 = vmmov 0   ;;  %v2178_v2 = vmov 0.0   ;;  %s2563_s18 = sld [smem:[#allocation24_spill]] }
  0x9a   :  { %1883 = vmatprep.subr.bf16.mxu0 %v2176_v1  ;;  %1751 = vmatprep.mubr.msk.f32.mxu0 %vm2177_vm0, %v2178_v2  ;;  %v2408_v6 = vld [vmem:[#allocation3] sm:$0x3]  ;;  %vm168_vm1 = vcmask 130048   ;;  %v166_v7 = vld [vmem:[#allocation8] sm:$0xf]  ;;  %vm246_vm2 = vcmask 1043456  }
  0x9b   :  { %1754 = vmatprep.subr.mxu1 %v2178_v2  ;;  %1756 = vmatprep.mubr.msk.f32.mxu1 %vm2177_vm0, %v2178_v2  ;;  %vm242_vm3 = vcmask 31744   ;;  %v165_v8 = vld [vmem:[#allocation6] sm:$0xf]  ;;  %vm320_vm4 = vcmask 15360   ;;  %vm327_vm5 = vcmask 1041408   ;;  %v2425_v15 = vld [vmem:[%s2542_s2 + $0x8] sm:$0xff] }
  0x9c   :  { %1755 = vmatpush3.msk.msra.mxu1 %vm246_vm2, %v166_v7  ;;  %v2418_v11 = vld [vmem:[%s2542_s2] sm:$0xff]  ;;  %v505_v18 = vld [vmem:[%s2547_s7 + $0x8] sm:$0xff]  ;;  %v506_v19 = vld [vmem:[%s2547_s7 + $0x10] sm:$0xff]  ;;  %vm579_vm6 = vcmask 261120   ;;  %s2180_s16 = smov [#allocation17]   ;;  %vm1622_vm7 = vcmask 8192  }
  0x9d   :  { %v504_v17 = vld [vmem:[%s2547_s7] sm:$0xff]  ;;  %v507_v21 = vld [vmem:[%s2547_s7 + $0x18] sm:$0xff]  ;;  %v1649_v23 = vld [vmem:[#allocation9] ss:$0 sm:$0xff]  ;;  %s1630_s26 = sshll.u32 %s2180_s16, 4  ;;  %s1631_s26 = int_to_ptr.vmem [resolvable:$true] %s1630_s26 }
  0x9e   :  { %v1890_v20 = vpack.c.bf16 %v505_v18, %v504_v17  ;;  %v1893_v22 = vpack.c.bf16 %v507_v21, %v506_v19  ;;  %v500_v35 = vld [vmem:[%s2546_s6] sm:$0xff]  ;;  %v501_v36 = vld [vmem:[%s2546_s6 + $0x8] sm:$0xff]  ;;  %v502_v37 = vld [vmem:[%s2546_s6 + $0x10] sm:$0xff]  ;;  %s2132_s28 = scalar_lea.vmem %s1631_s26, 16  ;;  %s2136_s10 = scalar_lea.vmem %s1631_s26, 32 }
  0x9f   :  { %v160_v3 = vld [vmem:[%s2563_s18] sm:$0xff]  ;;  %v161_v4 = vld [vmem:[%s2563_s18 + $0x8] sm:$0xff]  ;;  %v503_v38 = vld [vmem:[%s2546_s6 + $0x18] sm:$0xff]  ;;  %v1895_v39 = vpack.c.bf16 %v501_v36, %v500_v35  ;;  %p2133_p8 = scmp.ne.s32.totalorder %s1631_s26, %s2132_s28  ;;  %p2137_p9 = scmp.lt.s32.totalorder %s1631_s26, %s1631_s26 }
  0xa0   :  { %v1884_v5 = vpack.c.bf16 %v161_v4, %v160_v3  ;;  %v1899_v42 = vpack.c.bf16 %v503_v38, %v502_v37  ;;  %v1658_v45 = vld [vmem:[%s2548_s8] ss:$0 sm:$0xff]  ;;  %v826_v54 = vld [vmem:[#allocation12] sm:$0xff]  ;;  %v827_v55 = vld [vmem:[#allocation12 + $0x8] sm:$0xff]  ;;  %p2138_p10 = scmp.lt.s32.totalorder %s2136_s10, %s2132_s28 }
  0xa1   :  { %v1907_v57 = vpack.c.bf16 %v827_v55, %v826_v54  ;;  %v828_v58 = vld [vmem:[#allocation12 + $0x10] sm:$0xff]  ;;  %v829_v59 = vld [vmem:[#allocation12 + $0x18] sm:$0xff]  ;;  %v822_v63 = vld [vmem:[#allocation11] sm:$0xff]  ;;  %v1541_v54 = vlaneseq }
  0xa2   :  { %1885 = vmatpush3.bf16.msra.mxu0 %v1884_v5  ;;  %v1910_v60 = vpack.c.bf16 %v829_v59, %v828_v58  ;;  %v823_v0 = vld [vmem:[#allocation11 + $0x8] sm:$0xff]  ;;  %p2139_p11 = por %p2138_p10, %p2137_p9 }
  0xa3   :  { %1764 = vmatprep.subr.msk.mxu0 %vm246_vm2, %v165_v8  ;;  %v1912_v5 = vpack.c.bf16 %v823_v0, %v822_v63  ;;  %v1542_v55 = vshrl.u32 %v1541_v54, 7 }
  0xa4   :  { %p2140_p12 = pnand %p2139_p11, %p2133_p8 }
  0xa5   :  { %1752 = vmatmul.mubr.msk.f32.vlgmr.msra.gmra.mrb[0].mxu0 %vm168_vm1, %v2408_v6 }
  0xa6   :  { %1766 = vmatprep.mubr.msk.f32.mxu0 %vm242_vm3, %v160_v3  ;;  %1765 = vmatpush3.msk.msra.mxu0 %vm246_vm2, %v165_v8  ;;  %v824_v3 = vld [vmem:[#allocation11 + $0x10] sm:$0xff] }
  0xa7   :  { %1889 = vmatprep.subr.bf16.mxu0 %v2176_v1 }
  0xa9   :  { %1767 = vmatmul.mubr.msk.f32.vlgmr.msra.gmra.mrb[2].mxu0 %vm242_vm3, %v161_v4  ;;  %v825_v4 = vld [vmem:[#allocation11 + $0x18] sm:$0xff] }
  0xaa   :  { %1784 = vmatprep.mubr.msk.f32.mxu0 %vm2177_vm0, %v2178_v2  ;;  %1891 = vmatpush3.bf16.msra.mxu0 %v1890_v20 }
  0xab   :  { %1892 = vmatprep.subr.bf16.mxu0 %v2176_v1 }
  0xae   :  { %1894 = vmatpush3.bf16.msra.mxu0 %v1893_v22 }
  0xaf   :  { %1903 = vmatprep.subr.bf16.mxu0 %v2176_v1 }
 0x178   :  { %v238_v9 = vpop.f32.mrb[0].mxu0 }
 0x179   :  { %v1753_v10 = vpop.f32.mrb[1].mxu0  ;;  %1757 = vmatmul.mubr.msk.f32.vlgmr.msra.gmra.mrb[0].mxu1 %vm242_vm3, %v238_v9  ;;  %v1916_v9 = vpack.c.bf16 %v825_v4, %v824_v3 }
 0x17a   :  { %1761 = vmatprep.mubr.msk.f32.mxu1 %vm320_vm4, %v2418_v11 }
 0x17c   :  { %v1768_v12 = vpop.f32.mrb[2].mxu0 }
 0x17d   :  { %v487_v13 = vpop.f32.mrb[3].mxu0  ;;  %v493_v24 = vadd.f32 %v1768_v12, %v1649_v23 }
 0x17e   :  { %v488_v25 = vadd.f32 %v1649_v23, %v487_v13  ;;  %v1666_v13 = vld [vmem:[%s2551_s11] ss:$0 sm:$0xff]  ;;  %v1147_v23 = vld [vmem:[#allocation15] sm:$0xff] }
 0x24c   :  { %v316_v14 = vpop.f32.mrb[0].mxu1 }
 0x24d   :  { %v1758_v16 = vpop.f32.mrb[1].mxu1  ;;  %1759 = vmatprep.subr.msk.mxu1 %vm327_vm5, %v316_v14 }
 0x24e   :  { %1760 = vmatpush3.msk.msra.mxu1 %vm327_vm5, %v316_v14 }
 0x24f   :  { %1762 = vmatmul.mubr.msk.f32.vlgmr.msra.gmra.mrb[2].mxu1 %vm320_vm4, %v2425_v15  ;;  %1886 = vmatprep.subr.bf16.mxu1 %v2176_v1 }
 0x250   :  { %1773 = vmatprep.mubr.msk.f32.mxu1 %vm2177_vm0, %v2178_v2 }
 0x322   :  { %v1763_v26 = vpop.f32.mrb[2].mxu1 }
 0x323   :  { %v497_v27 = vsub.f32 %v493_v24, %v1763_v26  ;;  %v397_v28 = vpop.f32.mrb[3].mxu1  ;;  %v1148_v24 = vld [vmem:[#allocation15 + $0x8] sm:$0xff] }
 0x324   :  { %v496_v29 = vsub.f32 %v488_v25, %v397_v28  ;;  %v1924_v26 = vpack.c.bf16 %v1148_v24, %v1147_v23 }
 0x325   :  { %v499_v30 = vmax.f32 %v497_v27, 0.0  ;;  %v1150_v27 = vld [vmem:[#allocation15 + $0x18] sm:$0xff] }
 0x326   :  { %v498_v31 = vmax.f32 %v496_v29, 0.0 }
 0x328   :  { %v1887_v32 = vpack.c.bf16 %v499_v30, %v498_v31 }
 0x32a   :  { %1888 = vmatpush3.bf16.msra.mxu1 %v1887_v32  ;;  %v1144_v32 = vld [vmem:[#allocation14 + $0x8] sm:$0xff] }
 0x32d   :  { %1774 = vmatmul.mubr.msk.f32.vlgmr.msra.gmra.mrb[4].mxu1 %vm168_vm1, %v2408_v6 }
 0x32e   :  { %1789 = vmatprep.mubr.msk.f32.mxu1 %vm320_vm4, %v2418_v11 }
 0x400   :  { %v575_v33 = vpop.f32.mrb[4].mxu1 }
 0x401   :  { %v1775_v34 = vpop.f32.mrb[5].mxu1  ;;  %1785 = vmatmul.mubr.msk.f32.vlgmr.msra.gmra.mrb[4].mxu0 %vm579_vm6, %v575_v33  ;;  %v1145_v33 = vld [vmem:[#allocation14 + $0x10] sm:$0xff] }
 0x402   :  { %1807 = vmatprep.mubr.msk.f32.mxu0 %vm2177_vm0, %v2178_v2  ;;  %v1146_v34 = vld [vmem:[#allocation14 + $0x18] sm:$0xff] }
 0x403   :  { %v1933_v38 = vpack.c.bf16 %v1146_v34, %v1145_v33 }
 0x4d4   :  { %v649_v40 = vpop.f32.mrb[4].mxu0 }
 0x4d5   :  { %v1786_v41 = vpop.f32.mrb[5].mxu0  ;;  %1787 = vmatprep.subr.msk.mxu1 %vm327_vm5, %v649_v40 }
 0x4d6   :  { %1788 = vmatpush3.msk.msra.mxu1 %vm327_vm5, %v649_v40  ;;  %v1674_v40 = vld [vmem:[%s2554_s14] ss:$0 sm:$0xff] }
 0x4d7   :  { %1790 = vmatmul.mubr.msk.f32.vlgmr.msra.gmra.mrb[6].mxu1 %vm320_vm4, %v2425_v15  ;;  %1896 = vmatprep.subr.bf16.mxu1 %v1895_v39 }
 0x4d8   :  { %1898 = vmatpush3.bf16.msra.mxu1 %v1895_v39  ;;  %1800 = vmatprep.mubr.msk.f32.mxu1 %vm579_vm6, %v498_v31  ;;  %v1143_v31 = vld [vmem:[#allocation14] sm:$0xff] }
 0x4d9   :  { %1900 = vmatprep.subr.bf16.mxu1 %v1899_v42  ;;  %v1929_v35 = vpack.c.bf16 %v1144_v32, %v1143_v31 }
 0x4dc   :  { %1902 = vmatpush3.bf16.msra.mxu1 %v1899_v42 }
 0x4df   :  { %1801 = vmatmul.mubr.msk.f32.vlgmr.msra.gmra.mrb[8].mxu1 %vm579_vm6, %v499_v30 }
 0x4e0   :  { %1823 = vmatprep.mubr.msk.f32.mxu1 %vm320_vm4, %v2418_v11 }
 0x5aa   :  { %v1791_v43 = vpop.f32.mrb[6].mxu1 }
 0x5ab   :  { %v722_v44 = vpop.f32.mrb[7].mxu1 }
 0x5b2   :  { %v1802_v46 = vpop.f32.mrb[8].mxu1 }
 0x5b3   :  { %v815_v47 = vadd.f32 %v1802_v46, %v1658_v45  ;;  %v809_v48 = vpop.f32.mrb[9].mxu1 }
 0x5b4   :  { %v810_v49 = vadd.f32 %v1658_v45, %v809_v48 }
 0x5b5   :  { %v819_v50 = vsub.f32 %v815_v47, %v1791_v43 }
 0x5b6   :  { %v818_v51 = vsub.f32 %v810_v49, %v722_v44  ;;  %v1535_v49 = vld [vmem:[#allocation2] sm:$0x1] }
 0x5b7   :  { %v821_v52 = vmax.f32 %v819_v50, 0.0  ;;  %v2179_v50 = vmov 0  }
 0x5b8   :  { %v820_v53 = vmax.f32 %v818_v51, 0.0  ;;  %1955 = vset.pattern.permute.xlu0 %v2179_v50 }
 0x5b9   :  { %1538 = vperm.xlu0 %1955, %v1535_v49  }
 0x5ba   :  { %v1904_v56 = vpack.c.bf16 %v821_v52, %v820_v53 }
 0x5bc   :  { %1905 = vmatpush3.bf16.msra.mxu0 %v1904_v56 }
 0x5bd   :  { %1906 = vmatprep.subr.bf16.mxu0 %v2176_v1 }
 0x5bf   :  { %1808 = vmatmul.mubr.msk.f32.vlgmr.msra.gmra.mrb[6].mxu0 %vm168_vm1, %v2408_v6 }
 0x5c0   :  { %1908 = vmatpush3.bf16.msra.mxu0 %v1907_v57  ;;  %1818 = vmatprep.mubr.msk.f32.mxu0 %vm2177_vm0, %v2178_v2 }
 0x5c1   :  { %1909 = vmatprep.subr.bf16.mxu0 %v2176_v1 }
 0x5c4   :  { %1911 = vmatpush3.bf16.msra.mxu0 %v1910_v60 }
 0x5c5   :  { %1920 = vmatprep.subr.bf16.mxu0 %v2176_v1 }
 0x638   :  { %v1539_v56 = vpop.permute.xlu0 %1538 }
 0x692   :  { %v897_v61 = vpop.f32.mrb[6].mxu0 }
 0x693   :  { %v1809_v62 = vpop.f32.mrb[7].mxu0  ;;  %1819 = vmatmul.mubr.msk.f32.vlgmr.msra.gmra.mrb[8].mxu0 %vm579_vm6, %v897_v61 }
 0x694   :  { %1841 = vmatprep.mubr.msk.f32.mxu0 %vm2177_vm0, %v2178_v2 }
 0x766   :  { %v970_v7 = vpop.f32.mrb[8].mxu0 }
 0x767   :  { %v1820_v8 = vpop.f32.mrb[9].mxu0  ;;  %1821 = vmatprep.subr.msk.mxu1 %vm327_vm5, %v970_v7 }
 0x768   :  { %1822 = vmatpush3.msk.msra.mxu1 %vm327_vm5, %v970_v7 }
 0x769   :  { %1824 = vmatmul.mubr.msk.f32.vlgmr.msra.gmra.mrb[10].mxu1 %vm320_vm4, %v2425_v15  ;;  %1913 = vmatprep.subr.bf16.mxu1 %v1912_v5 }
 0x76a   :  { %1915 = vmatpush3.bf16.msra.mxu1 %v1912_v5  ;;  %1834 = vmatprep.mubr.msk.f32.mxu1 %vm579_vm6, %v820_v53  ;;  %v1534_v53 = vld [vmem:[%s2555_s15] sm:$0x1] }
 0x76b   :  { %1917 = vmatprep.subr.bf16.mxu1 %v1916_v9 }
 0x76e   :  { %1919 = vmatpush3.bf16.msra.mxu1 %v1916_v9 }
 0x771   :  { %1835 = vmatmul.mubr.msk.f32.vlgmr.msra.gmra.mrb[12].mxu1 %vm579_vm6, %v821_v52 }
 0x772   :  { %1857 = vmatprep.mubr.msk.f32.mxu1 %vm320_vm4, %v2418_v11  ;;  %v1149_v11 = vld [vmem:[#allocation15 + $0x10] sm:$0xff] }
 0x773   :  { %v1927_v28 = vpack.c.bf16 %v1150_v27, %v1149_v11 }
 0x83c   :  { %v1825_v10 = vpop.f32.mrb[10].mxu1 }
 0x83d   :  { %v1043_v12 = vpop.f32.mrb[11].mxu1 }
 0x844   :  { %v1836_v14 = vpop.f32.mrb[12].mxu1 }
 0x845   :  { %v1136_v16 = vadd.f32 %v1836_v14, %v1666_v13  ;;  %v1130_v17 = vpop.f32.mrb[13].mxu1 }
 0x846   :  { %v1131_v18 = vadd.f32 %v1666_v13, %v1130_v17 }
 0x847   :  { %v1140_v19 = vsub.f32 %v1136_v16, %v1825_v10 }
 0x848   :  { %v1139_v20 = vsub.f32 %v1131_v18, %v1043_v12 }
 0x849   :  { %v1142_v21 = vmax.f32 %v1140_v19, 0.0 }
 0x84a   :  { %v1141_v22 = vmax.f32 %v1139_v20, 0.0 }
 0x84c   :  { %v1921_v25 = vpack.c.bf16 %v1142_v21, %v1141_v22 }
 0x84e   :  { %1922 = vmatpush3.bf16.msra.mxu0 %v1921_v25 }
 0x84f   :  { %1923 = vmatprep.subr.bf16.mxu0 %v2176_v1 }
 0x851   :  { %1842 = vmatmul.mubr.msk.f32.vlgmr.msra.gmra.mrb[10].mxu0 %vm168_vm1, %v2408_v6 }
 0x852   :  { %1925 = vmatpush3.bf16.msra.mxu0 %v1924_v26  ;;  %1852 = vmatprep.mubr.msk.f32.mxu0 %vm2177_vm0, %v2178_v2 }
 0x853   :  { %1926 = vmatprep.subr.bf16.mxu0 %v2176_v1 }
 0x856   :  { %1928 = vmatpush3.bf16.msra.mxu0 %v1927_v28 }
 0x857   :  { %1937 = vmatprep.subr.bf16.mxu0 %v2176_v1 }
 0x924   :  { %v1218_v29 = vpop.f32.mrb[10].mxu0 }
 0x925   :  { %v1843_v30 = vpop.f32.mrb[11].mxu0  ;;  %1853 = vmatmul.mubr.msk.f32.vlgmr.msra.gmra.mrb[12].mxu0 %vm579_vm6, %v1218_v29 }
 0x926   :  { %1875 = vmatprep.mubr.msk.f32.mxu0 %vm2177_vm0, %v2178_v2 }
 0x9f8   :  { %v1291_v36 = vpop.f32.mrb[12].mxu0 }
 0x9f9   :  { %v1854_v37 = vpop.f32.mrb[13].mxu0  ;;  %1855 = vmatprep.subr.msk.mxu1 %vm327_vm5, %v1291_v36 }
 0x9fa   :  { %1856 = vmatpush3.msk.msra.mxu1 %vm327_vm5, %v1291_v36 }
 0x9fb   :  { %1858 = vmatmul.mubr.msk.f32.vlgmr.msra.gmra.mrb[14].mxu1 %vm320_vm4, %v2425_v15  ;;  %1930 = vmatprep.subr.bf16.mxu1 %v1929_v35 }
 0x9fc   :  { %1932 = vmatpush3.bf16.msra.mxu1 %v1929_v35  ;;  %1868 = vmatprep.mubr.msk.f32.mxu1 %vm579_vm6, %v1141_v22 }
 0x9fd   :  { %1934 = vmatprep.subr.bf16.mxu1 %v1933_v38 }
 0xa00   :  { %1936 = vmatpush3.bf16.msra.mxu1 %v1933_v38 }
 0xa03   :  { %1869 = vmatmul.mubr.msk.f32.vlgmr.msra.gmra.mrb[16].mxu1 %vm579_vm6, %v1142_v21 }
 0xace   :  { %v1859_v1 = vpop.f32.mrb[14].mxu1 }
 0xacf   :  { %v1364_v39 = vpop.f32.mrb[15].mxu1 }
 0xad6   :  { %v1870_v41 = vpop.f32.mrb[16].mxu1 }
 0xad7   :  { %v1457_v42 = vadd.f32 %v1870_v41, %v1674_v40  ;;  %v1451_v43 = vpop.f32.mrb[17].mxu1 }
 0xad8   :  { %v1452_v44 = vadd.f32 %v1674_v40, %v1451_v43 }
 0xad9   :  { %v1461_v45 = vsub.f32 %v1457_v42, %v1859_v1 }
 0xada   :  { %v1460_v15 = vsub.f32 %v1452_v44, %v1364_v39 }
 0xadb   :  { %v1463_v46 = vmax.f32 %v1461_v45, 0.0 }
 0xadc   :  { %v1462_v47 = vmax.f32 %v1460_v15, 0.0 }
 0xade   :  { %v1938_v48 = vpack.c.bf16 %v1463_v46, %v1462_v47 }
 0xae0   :  { %1939 = vmatpush3.bf16.msra.mxu0 %v1938_v48 }
 0xae1   :  { %1878 = vmatprep.subr.mxu0 %v2178_v2 }
 0xae3   :  { %1876 = vmatmul.mubr.msk.f32.vlgmr.msra.gmra.mrb[14].mxu0 %vm168_vm1, %v2408_v6  ;;  %v1543_v6 = vsub.s32 0, %v1542_v55 }
 0xae4   :  { %1880 = vmatprep.mubr.msk.f32.mxu0 %vm2177_vm0, %v2178_v2 }
 0xae5   :  { %v1544_v57 = vrot.slane %v1539_v56, %v1543_v6 }
 0xbb6   :  { %v1530_v51 = vpop.f32.mrb[14].mxu0 }
 0xbb7   :  { %v1877_v52 = vpop.f32.mrb[15].mxu0  ;;  %1879 = vmatpush3.xpose.msk.msra.mxu0 %vm579_vm6, %v1530_v51 }
 0xbba   :  { %1881 = vmatmul.mubr.msk.f32.vlgmr.msra.gmra.mrb[16].mxu0 %vm579_vm6, %v1534_v53 }
 0xc8d   :  { %v1617_v2 = vpop.f32.mrb[16].mxu0 }
 0xc8e   :  { %v1618_v58 = vadd.f32 %v1617_v2, %v1544_v57  ;;  %v1882_v59 = vpop.f32.mrb[17].mxu0 }
 0xc90   :  { %v1621_v60 = vmax.f32 %v1618_v58, 0.0 }
 0xc92   :  { %1623 = vst.msk [vmem:[#allocation17] sm:$0x1] %vm1622_vm7, %v1621_v60 }
 0xc93   :  { %2143 = shalt.err (!%p2140_p12)
}
 0xc94   :  { %s2144_s0 = scalar_lea.hbm %s2557_s17, 16 }
 0xc95   :  { %p2145_p13 = scmp.ne.s32.totalorder %s2557_s17, %s2144_s0  ;;  %p2148_p0 = scmp.lt.u32.totalorder %s2144_s0, %s2557_s17 }
 0xc97   :  { %p2150_p1 = pnand %p2148_p0, %p2145_p13 }
 0xc99   :  { %2153 = shalt.err (!%p2150_p1)
}
 0xc9a   :  { %1633 = dma.vmem_to_hbm [thread:$0]  %s1631_s26, 16, %s2557_s17, [#allocation5]  }
 0xc9b   :  { %2164 = dma.done.wait [#allocation5], 16  }
 0xc9c   :  { %2165 = vsyncadd [#allocation5], 4294967280 }
 0xc9d   :  { %1637 = vsyncpa [#allocation4], 1 }
 0xc9e   :  { %1638 = vsyncpa [#allocation7], 1 }
 0xc9f   :  { %1639 = vsyncpa [#allocation10], 1 }
 0xca0   :  { %1640 = vsyncpa [#allocation13], 1 }
 0xca1   :  { %1641 = vsyncpa [#allocation16], 1 }
 0xca2   :  { %1642 = vsyncpa [#allocation5], 1 }

</bundles_post_ra>
